<compile_context>
chip_gen: v6e
topology: v6e:2x2x1
jax: 0.10.0
libtpu: 0.0.40
codegen_flags: <defaults>
</compile_context>

<pallas_src>
import jax
import jax.numpy as jnp
from jax.experimental import pallas as pl
from jax.experimental.pallas import tpu as pltpu


# ----------------------------- config ---------------------------------------
ENC_DIM = 32              # encoder_dimension  (E)
E2 = 2 * ENC_DIM          # 64
IN_DIM = 5                # tendency / career feature width
OUT_DIM = 3
BATCH = 8

HID = 128                 # all hidden activations kept at one full vreg lane width
MAX_TM = 128              # batch tile (rows per grid step)

# bf16 weight slab: four 128x128 blocks, 8/16-aligned, 128 KiB total.
W_W1 = 0 * HID            # block-diag enc1/enc2 Linear(E,E)
W_D0 = 1 * HID            # decoder Linear(2E,2E) #0  (zero-padded to 128x128)
W_D1 = 2 * HID            # decoder Linear(2E,2E) #1
W_FC = 3 * HID            # final fc (only [:E2, :OUT_DIM] nonzero)
WSLAB_ROWS = 4 * HID      # 512

# f32 slab: first-layer weights + biases, every block at an 8-aligned row.
F_W0A = 0                 # enc1 Linear(5,E)  -> lanes [0:E)
F_W0B = 8                 # enc2 Linear(5,E)  -> lanes [E:2E)
F_B0 = 16                 # bias of fused first Linear
F_B1 = 24                 # bias of fused second Linear
F_DB0 = 32                # decoder bias #0
F_DB1 = 40                # decoder bias #1
F_FCB = 48                # fc bias
F_ROWS = 56               # 56*128*4 B = 28 KiB


# ----------------------------- kernel ----------------------------------------
def role_classifier_kernel(src1_ref, src2_ref, wslab_ref, fslab_ref, out_ref):
    f32 = jnp.float32
    bf16 = jnp.bfloat16

    x1 = src1_ref[...]                                   # [tm, 5] f32
    x2 = src2_ref[...]                                   # [tm, 5] f32

    # Static, aligned views into the two parameter slabs (zero-cost).
    w0a = fslab_ref[F_W0A:F_W0A + IN_DIM, :]             # [5, 128] f32
    w0b = fslab_ref[F_W0B:F_W0B + IN_DIM, :]             # [5, 128] f32
    b0 = fslab_ref[F_B0:F_B0 + 1, :]                     # [1, 128] f32, 8-aligned
    b1 = fslab_ref[F_B1:F_B1 + 1, :]
    db0 = fslab_ref[F_DB0:F_DB0 + 1, :]
    db1 = fslab_ref[F_DB1:F_DB1 + 1, :]
    fcb = fslab_ref[F_FCB:F_FCB + 1, :]

    w1 = wslab_ref[W_W1:W_W1 + HID, :]                   # [128, 128] bf16
    d0 = wslab_ref[W_D0:W_D0 + HID, :]
    d1 = wslab_ref[W_D1:W_D1 + HID, :]
    fc = wslab_ref[W_FC:W_FC + HID, :]

    # Fused encoder1/encoder2 first Linear(5,E): src1 -> lanes [0:E), src2 -> [E:2E).
    # Padded lanes (>= 2E) stay exactly 0 through every layer (zero weights/biases,
    # ReLU(0)=tanh(0)=0).  Dropout = identity (eval mode).
    h = (jnp.dot(x1, w0a, preferred_element_type=f32)
         + jnp.dot(x2, w0b, preferred_element_type=f32) + b0)         # [tm, 128]
    # Second encoder Linear (block-diagonal) + ReLU, bf16 MXU path, f32 accumulate.
    h = jnp.maximum(
        jnp.dot(h.astype(bf16), w1, preferred_element_type=f32) + b1, 0.0)
    # Decoder: 2 x [Linear(2E,2E), tanh].
    h = jnp.tanh(jnp.dot(h.astype(bf16), d0, preferred_element_type=f32) + db0)
    h = jnp.tanh(jnp.dot(h.astype(bf16), d1, preferred_element_type=f32) + db1)
    # Final fc: real logits live in lanes 0..2; store lane-dense [tm, 128].
    out = jnp.dot(h.astype(bf16), fc, preferred_element_type=f32) + fcb
    out_ref[...] = out.astype(out_ref.dtype)


# ----------------------------- host-side packing ------------------------------
def pack_params(p):
    """Pack params into (bf16 weight slab [512,128], f32 slab [56,128])."""
    E = ENC_DIM
    w = jnp.zeros((WSLAB_ROWS, HID), jnp.float32)
    # W1: block-diagonal [enc1 Linear(E,E) | enc2 Linear(E,E)]
    w = w.at[W_W1:W_W1 + E, 0:E].set(p["e1_w1"])
    w = w.at[W_W1 + E:W_W1 + E2, E:E2].set(p["e2_w1"])
    # Decoder Linears (2E x 2E), zero-padded to 128x128.
    w = w.at[W_D0:W_D0 + E2, 0:E2].set(p["d_w0"])
    w = w.at[W_D1:W_D1 + E2, 0:E2].set(p["d_w1"])
    # Final fc (2E x 3), zero-padded.
    w = w.at[W_FC:W_FC + E2, 0:OUT_DIM].set(p["fc_w"])
    wslab = w.astype(jnp.bfloat16)

    f = jnp.zeros((F_ROWS, HID), jnp.float32)
    f = f.at[F_W0A:F_W0A + IN_DIM, 0:E].set(p["e1_w0"])
    f = f.at[F_W0B:F_W0B + IN_DIM, E:E2].set(p["e2_w0"])
    f = f.at[F_B0, 0:E].set(p["e1_b0"][0])
    f = f.at[F_B0, E:E2].set(p["e2_b0"][0])
    f = f.at[F_B1, 0:E].set(p["e1_b1"][0])
    f = f.at[F_B1, E:E2].set(p["e2_b1"][0])
    f = f.at[F_DB0, 0:E2].set(p["d_b0"][0])
    f = f.at[F_DB1, 0:E2].set(p["d_b1"][0])
    f = f.at[F_FCB, 0:OUT_DIM].set(p["fc_b"][0])
    return wslab, f


# ----------------------------- wrapper ----------------------------------------
def _round_up(x, m):
    return ((x + m - 1) // m) * m


@jax.jit
def role_classifier_forward(src1, src2, wslab, fslab):
    B = src1.shape[0]
    tm = MAX_TM if B >= MAX_TM else _round_up(B, 8)
    b_pad = _round_up(B, tm)
    if b_pad != B:  # zero rows are harmless (tanh(bias) finite) and sliced off below
        src1 = jnp.pad(src1, ((0, b_pad - B), (0, 0)))
        src2 = jnp.pad(src2, ((0, b_pad - B), (0, 0)))
    grid = (b_pad // tm,)

    flops = 2 * b_pad * (2 * IN_DIM * HID + 4 * HID * HID)
    bytes_accessed = (4 * 2 * b_pad * IN_DIM            # src1 + src2 (f32)
                      + 2 * WSLAB_ROWS * HID            # bf16 weight slab
                      + 4 * F_ROWS * HID                # f32 slab
                      + 4 * b_pad * HID)                # output

    out_padded = pl.pallas_call(
        role_classifier_kernel,
        out_shape=jax.ShapeDtypeStruct((b_pad, HID), jnp.float32),
        grid=grid,
        in_specs=[
            pl.BlockSpec((tm, IN_DIM), lambda i: (i, 0)),
            pl.BlockSpec((tm, IN_DIM), lambda i: (i, 0)),
            # Constant index_map: slabs are DMA'd once and stay VMEM-resident
            # across all batch-grid steps.
            pl.BlockSpec((WSLAB_ROWS, HID), lambda i: (0, 0)),
            pl.BlockSpec((F_ROWS, HID), lambda i: (0, 0)),
        ],
        out_specs=pl.BlockSpec((tm, HID), lambda i: (i, 0)),
        compiler_params=pltpu.CompilerParams(
            dimension_semantics=("parallel",)),     # v7x: split batch over 2 TCs
        cost_estimate=pl.CostEstimate(
            flops=flops,
            transcendentals=2 * b_pad * HID,        # two tanh layers
            bytes_accessed=bytes_accessed),
    )(src1, src2, wslab, fslab)
    return out_padded[:B, :OUT_DIM]


# ----------------------------- reference (plain JAX, f32) ---------------------
def role_classifier_reference(src1, src2, p):
    h1 = src1 @ p["e1_w0"] + p["e1_b0"]
    h1 = jnp.maximum(h1 @ p["e1_w1"] + p["e1_b1"], 0.0)
    h2 = src2 @ p["e2_w0"] + p["e2_b0"]
    h2 = jnp.maximum(h2 @ p["e2_w1"] + p["e2_b1"], 0.0)
    h = jnp.concatenate([h1, h2], axis=1)
    h = jnp.tanh(h @ p["d_w0"] + p["d_b0"])
    h = jnp.tanh(h @ p["d_w1"] + p["d_b1"])
    return h @ p["fc_w"] + p["fc_b"]


# ----------------------------- param init -------------------------------------
def init_params(key):
    def linear(key, fan_in, fan_out):
        kw, kb = jax.random.split(key)
        bound = 1.0 / jnp.sqrt(fan_in)
        w = jax.random.uniform(kw, (fan_in, fan_out), jnp.float32, -bound, bound)
        b = jax.random.uniform(kb, (1, fan_out), jnp.float32, -bound, bound)
        return w, b

    keys = jax.random.split(key, 7)
    E = ENC_DIM
    p = {}
    p["e1_w0"], p["e1_b0"] = linear(keys[0], IN_DIM, E)
    p["e1_w1"], p["e1_b1"] = linear(keys[1], E, E)
    p["e2_w0"], p["e2_b0"] = linear(keys[2], IN_DIM, E)
    p["e2_w1"], p["e2_b1"] = linear(keys[3], E, E)
    p["d_w0"], p["d_b0"] = linear(keys[4], E2, E2)
    p["d_w1"], p["d_b1"] = linear(keys[5], E2, E2)
    p["fc_w"], p["fc_b"] = linear(keys[6], E2, OUT_DIM)
    return p


# ----------------------------- main --------------------------------------------
if __name__ == "__main__":
    key = jax.random.PRNGKey(0)
    k1, k2, kp = jax.random.split(key, 3)

    # examples['tendency'], examples['career']: [B, 5] float32
    tendency = jax.random.normal(k1, (BATCH, IN_DIM), jnp.float32)
    career = jax.random.normal(k2, (BATCH, IN_DIM), jnp.float32)
    params = init_params(kp)

    wslab, fslab = jax.block_until_ready(pack_params(params))   # packed once

    out = role_classifier_forward(tendency, career, wslab, fslab)
    out = jax.block_until_ready(out)

    ref = role_classifier_reference(tendency, career, params)
    assert out.shape == (BATCH, OUT_DIM), out.shape
    max_err = jnp.max(jnp.abs(out - ref))
    # bf16 weights -> relaxed tolerance vs the f32 reference.
    assert jnp.allclose(out, ref, atol=5e-2, rtol=5e-2), f"max abs err {max_err}"
    print("KERNEL_OK")
</pallas_src>

<mosaic_0001>
module attributes {stable_mosaic.version = 11 : i64} {
  func.func @role_classifier_kernel(%arg0: i32, %arg1: memref<8x5xf32, #tpu.memory_space<vmem>>, %arg2: memref<8x5xf32, #tpu.memory_space<vmem>>, %arg3: memref<512x128xbf16, #tpu.memory_space<vmem>>, %arg4: memref<56x128xf32, #tpu.memory_space<vmem>>, %arg5: memref<8x128xf32, #tpu.memory_space<vmem>>) attributes {dimension_semantics = [#tpu.dimension_semantics<parallel>], iteration_bounds = array<i64: 1>, scalar_prefetch = 0 : i64, scratch_operands = 0 : i64, tpu.core_type = #tpu.core_type<tc>, window_params = [{transform_indices = @transform_0, window_bounds = array<i64: 8, 5>}, {transform_indices = @transform_1, window_bounds = array<i64: 8, 5>}, {pipeline_mode = #tpu.pipeline_mode<synchronous>, transform_indices = @transform_2, window_bounds = array<i64: 512, 128>}, {pipeline_mode = #tpu.pipeline_mode<synchronous>, transform_indices = @transform_3, window_bounds = array<i64: 56, 128>}, {transform_indices = @transform_4, window_bounds = array<i64: 8, 128>}]} {
    %c0 = arith.constant 0 : index
    %c0_0 = arith.constant 0 : index
    %0 = vector.load %arg1[%c0, %c0_0] : memref<8x5xf32, #tpu.memory_space<vmem>>, vector<8x5xf32>
    %c0_1 = arith.constant 0 : index
    %c0_2 = arith.constant 0 : index
    %1 = vector.load %arg2[%c0_1, %c0_2] : memref<8x5xf32, #tpu.memory_space<vmem>>, vector<8x5xf32>
    %c0_3 = arith.constant 0 : index
    %c0_4 = arith.constant 0 : index
    %2 = vector.load %arg4[%c0_3, %c0_4] : memref<56x128xf32, #tpu.memory_space<vmem>>, vector<5x128xf32>
    %c8 = arith.constant 8 : index
    %c0_5 = arith.constant 0 : index
    %3 = vector.load %arg4[%c8, %c0_5] : memref<56x128xf32, #tpu.memory_space<vmem>>, vector<5x128xf32>
    %c16 = arith.constant 16 : index
    %c0_6 = arith.constant 0 : index
    %4 = vector.load %arg4[%c16, %c0_6] : memref<56x128xf32, #tpu.memory_space<vmem>>, vector<1x128xf32>
    %c24 = arith.constant 24 : index
    %c0_7 = arith.constant 0 : index
    %5 = vector.load %arg4[%c24, %c0_7] : memref<56x128xf32, #tpu.memory_space<vmem>>, vector<1x128xf32>
    %c32 = arith.constant 32 : index
    %c0_8 = arith.constant 0 : index
    %6 = vector.load %arg4[%c32, %c0_8] : memref<56x128xf32, #tpu.memory_space<vmem>>, vector<1x128xf32>
    %c40 = arith.constant 40 : index
    %c0_9 = arith.constant 0 : index
    %7 = vector.load %arg4[%c40, %c0_9] : memref<56x128xf32, #tpu.memory_space<vmem>>, vector<1x128xf32>
    %c48 = arith.constant 48 : index
    %c0_10 = arith.constant 0 : index
    %8 = vector.load %arg4[%c48, %c0_10] : memref<56x128xf32, #tpu.memory_space<vmem>>, vector<1x128xf32>
    %c0_11 = arith.constant 0 : index
    %c0_12 = arith.constant 0 : index
    %9 = vector.load %arg3[%c0_11, %c0_12] : memref<512x128xbf16, #tpu.memory_space<vmem>>, vector<128x128xbf16>
    %c128 = arith.constant 128 : index
    %c0_13 = arith.constant 0 : index
    %10 = vector.load %arg3[%c128, %c0_13] : memref<512x128xbf16, #tpu.memory_space<vmem>>, vector<128x128xbf16>
    %c256 = arith.constant 256 : index
    %c0_14 = arith.constant 0 : index
    %11 = vector.load %arg3[%c256, %c0_14] : memref<512x128xbf16, #tpu.memory_space<vmem>>, vector<128x128xbf16>
    %c384 = arith.constant 384 : index
    %c0_15 = arith.constant 0 : index
    %12 = vector.load %arg3[%c384, %c0_15] : memref<512x128xbf16, #tpu.memory_space<vmem>>, vector<128x128xbf16>
    %cst = arith.constant dense<0.000000e+00> : vector<8x128xf32>
    %13 = tpu.matmul %0, %2, %cst {dimension_numbers = #tpu.dot_dimension_numbers<[1], [0], [0], [1], [0, 0, 1, 1], [], []>} : vector<8x5xf32>, vector<5x128xf32>, vector<8x128xf32> -> vector<8x128xf32>
    %cst_16 = arith.constant dense<0.000000e+00> : vector<8x128xf32>
    %14 = tpu.matmul %1, %3, %cst_16 {dimension_numbers = #tpu.dot_dimension_numbers<[1], [0], [0], [1], [0, 0, 1, 1], [], []>} : vector<8x5xf32>, vector<5x128xf32>, vector<8x128xf32> -> vector<8x128xf32>
    %15 = arith.addf %13, %14 : vector<8x128xf32>
    %16 = vector.broadcast %4 : vector<1x128xf32> to vector<8x128xf32>
    %17 = arith.addf %15, %16 : vector<8x128xf32>
    %18 = arith.truncf %17 : vector<8x128xf32> to vector<8x128xbf16>
    %cst_17 = arith.constant dense<0.000000e+00> : vector<8x128xf32>
    %19 = tpu.matmul %18, %9, %cst_17 {dimension_numbers = #tpu.dot_dimension_numbers<[1], [0], [0], [1], [0, 0, 1, 1], [], []>} : vector<8x128xbf16>, vector<128x128xbf16>, vector<8x128xf32> -> vector<8x128xf32>
    %20 = vector.broadcast %5 : vector<1x128xf32> to vector<8x128xf32>
    %21 = arith.addf %19, %20 : vector<8x128xf32>
    %cst_18 = arith.constant 0.000000e+00 : f32
    %22 = vector.broadcast %cst_18 : f32 to vector<8x128xf32>
    %23 = arith.maximumf %21, %22 : vector<8x128xf32>
    %24 = arith.truncf %23 : vector<8x128xf32> to vector<8x128xbf16>
    %cst_19 = arith.constant dense<0.000000e+00> : vector<8x128xf32>
    %25 = tpu.matmul %24, %10, %cst_19 {dimension_numbers = #tpu.dot_dimension_numbers<[1], [0], [0], [1], [0, 0, 1, 1], [], []>} : vector<8x128xbf16>, vector<128x128xbf16>, vector<8x128xf32> -> vector<8x128xf32>
    %26 = vector.broadcast %6 : vector<1x128xf32> to vector<8x128xf32>
    %27 = arith.addf %25, %26 : vector<8x128xf32>
    %28 = math.tanh %27 : vector<8x128xf32>
    %29 = arith.truncf %28 : vector<8x128xf32> to vector<8x128xbf16>
    %cst_20 = arith.constant dense<0.000000e+00> : vector<8x128xf32>
    %30 = tpu.matmul %29, %11, %cst_20 {dimension_numbers = #tpu.dot_dimension_numbers<[1], [0], [0], [1], [0, 0, 1, 1], [], []>} : vector<8x128xbf16>, vector<128x128xbf16>, vector<8x128xf32> -> vector<8x128xf32>
    %31 = vector.broadcast %7 : vector<1x128xf32> to vector<8x128xf32>
    %32 = arith.addf %30, %31 : vector<8x128xf32>
    %33 = math.tanh %32 : vector<8x128xf32>
    %34 = arith.truncf %33 : vector<8x128xf32> to vector<8x128xbf16>
    %cst_21 = arith.constant dense<0.000000e+00> : vector<8x128xf32>
    %35 = tpu.matmul %34, %12, %cst_21 {dimension_numbers = #tpu.dot_dimension_numbers<[1], [0], [0], [1], [0, 0, 1, 1], [], []>} : vector<8x128xbf16>, vector<128x128xbf16>, vector<8x128xf32> -> vector<8x128xf32>
    %36 = vector.broadcast %8 : vector<1x128xf32> to vector<8x128xf32>
    %37 = arith.addf %35, %36 : vector<8x128xf32>
    %c0_22 = arith.constant 0 : index
    %c0_23 = arith.constant 0 : index
    %38 = vector.load %arg5[%c0_22, %c0_23] : memref<8x128xf32, #tpu.memory_space<vmem>>, vector<8x128xf32>
    tpu.vector_store %arg5[%c0_22, %c0_23], %37 {strides = array<i32>} : memref<8x128xf32, #tpu.memory_space<vmem>>, vector<8x128xf32>,
    return
  }
  func.func @transform_0(%arg0: i32) -> (i32, i32) {
    %c0_i32 = arith.constant 0 : i32
    %c0_i32_0 = arith.constant 0 : i32
    return %arg0, %c0_i32 : i32, i32
  }
  func.func @transform_1(%arg0: i32) -> (i32, i32) {
    %c0_i32 = arith.constant 0 : i32
    %c0_i32_0 = arith.constant 0 : i32
    return %arg0, %c0_i32 : i32, i32
  }
  func.func @transform_2(%arg0: i32) -> (i32, i32) {
    %c0_i32 = arith.constant 0 : i32
    %c0_i32_0 = arith.constant 0 : i32
    %c0_i32_1 = arith.constant 0 : i32
    return %c0_i32, %c0_i32_0 : i32, i32
  }
  func.func @transform_3(%arg0: i32) -> (i32, i32) {
    %c0_i32 = arith.constant 0 : i32
    %c0_i32_0 = arith.constant 0 : i32
    %c0_i32_1 = arith.constant 0 : i32
    return %c0_i32, %c0_i32_0 : i32, i32
  }
  func.func @transform_4(%arg0: i32) -> (i32, i32) {
    %c0_i32 = arith.constant 0 : i32
    %c0_i32_0 = arith.constant 0 : i32
    return %arg0, %c0_i32 : i32, i32
  }
}

</mosaic_0001>

<bundles_post_ra>
// kernel: role_classifier_forward.1
= control target key start
LH: loop header
LB: loop body
LE: loop exit
PB: predicated region body
PF: predicated region fallthrough
CT: control target
= control target key end

     0   :  { %9 = vsyncpa [#allocation3], 0  ;;  %s1083_s0 = inlined_call_operand.hbm [shape: f32[8,5], index: 0, kind: input, shape index: {}]   ;;  %s1084_s1 = inlined_call_operand.hbm [shape: f32[8,5], index: 1, kind: input, shape index: {}]   ;;  %s1085_s2 = inlined_call_operand.hbm [shape: bf16[512,128], index: 2, kind: input, shape index: {}]   ;;  %s1086_s3 = inlined_call_operand.hbm [shape: f32[56,128], index: 3, kind: input, shape index: {}]   ;;  %s1087_s4 = inlined_call_operand.vmem [shape: f32[8,128], index: 4, kind: output, shape index: {}]  }
   0x1   :  { %10 = vsyncpa [#allocation5], 0 }
   0x2   :  { %11 = vsyncpa [#allocation8], 0  ;;  %s987_s15 = smov [#allocation4]   ;;  %s988_s17 = smov [#allocation2]  }
   0x3   :  { %s28_s16 = sshll.u32 %s987_s15, 4  ;;  %s18_s18 = sshll.u32 %s988_s17, 4  ;;  %s29_s16 = int_to_ptr.vmem [resolvable:$true] %s28_s16  ;;  %s19_s18 = int_to_ptr.vmem [resolvable:$true] %s18_s18 }
   0x4   :  { %s909_s19 = scalar_lea.vmem %s29_s16, 128  ;;  %p914_p1 = scmp.lt.s32.totalorder %s29_s16, %s29_s16 }
   0x5   :  { %p910_p0 = scmp.ne.s32.totalorder %s29_s16, %s909_s19  ;;  %p915_p2 = scmp.lt.s32.totalorder %s909_s19, %s909_s19 }
   0x7   :  { %p916_p3 = por %p915_p2, %p914_p1 }
   0x9   :  { %p917_p4 = pnand %p916_p3, %p910_p0 }
   0xb   :  { %920 = shalt.err (!%p917_p4)
}
   0xc   :  { %31 = dma.hbm_to_vmem [thread:$0]  %s1084_s1, 128, %s29_s16, [#allocation5]  }
   0xd   :  { %s929_s22 = scalar_lea.vmem %s19_s18, 128  ;;  %p934_p6 = scmp.lt.s32.totalorder %s19_s18, %s19_s18 }
   0xe   :  { %p930_p5 = scmp.ne.s32.totalorder %s19_s18, %s929_s22  ;;  %p935_p7 = scmp.lt.s32.totalorder %s929_s22, %s929_s22 }
  0x10   :  { %p936_p8 = por %p935_p7, %p934_p6 }
  0x12   :  { %p937_p9 = pnand %p936_p8, %p930_p5 }
  0x14   :  { %940 = shalt.err (!%p937_p9)
}
  0x15   :  { %21 = dma.hbm_to_vmem [thread:$0]  %s1083_s0, 128, %s19_s18, [#allocation3]  }
  0x16   :  { %s989_s25 = smov [#allocation6]  }
  0x17   :  { %s37_s26 = sshll.u32 %s989_s25, 4  ;;  %s38_s26 = int_to_ptr.vmem [resolvable:$true] %s37_s26 }
  0x18   :  { %s949_s27 = scalar_lea.vmem %s38_s26, 4096  ;;  %p954_p11 = scmp.lt.s32.totalorder %s38_s26, %s38_s26 }
  0x19   :  { %p950_p10 = scmp.ne.s32.totalorder %s38_s26, %s949_s27  ;;  %p955_p12 = scmp.lt.s32.totalorder %s949_s27, %s949_s27 }
  0x1b   :  { %p956_p13 = por %p955_p12, %p954_p11 }
  0x1d   :  { %p957_p0 = pnand %p956_p13, %p950_p10 }
  0x1f   :  { %960 = shalt.err (!%p957_p0)
}
  0x20   :  { %s990_s1 = smov 64   ;;  %s991_s28 = smov 4  }
  0x21   :  { %43 = dma.hbm_to_vmem [thread:$0]  %s1085_s2, 4096, %s38_s26, [#allocation5], %s990_s1, %s990_s1, %s991_s28  }
  0x22   :  { %s992_s5 = smov [#allocation7]  }
  0x23   :  { %s49_s6 = sshll.u32 %s992_s5, 4  ;;  %s50_s6 = int_to_ptr.vmem [resolvable:$true] %s49_s6 }
  0x24   :  { %s969_s0 = scalar_lea.vmem %s50_s6, 896  ;;  %p974_p2 = scmp.lt.s32.totalorder %s50_s6, %s50_s6 }
  0x25   :  { %p970_p1 = scmp.ne.s32.totalorder %s50_s6, %s969_s0  ;;  %p975_p3 = scmp.lt.s32.totalorder %s969_s0, %s969_s0 }
  0x27   :  { %p976_p4 = por %p975_p3, %p974_p2 }
  0x29   :  { %p977_p5 = pnand %p976_p4, %p970_p1 }
  0x2b   :  { %980 = shalt.err (!%p977_p5)
}
  0x2c   :  { %s993_s7 = smov 128   ;;  %s994_s8 = smov 8  }
  0x2d   :  { %55 = dma.hbm_to_vmem [thread:$0]  %s1086_s3, 896, %s50_s6, [#allocation8], %s993_s7, %s993_s7, %s994_s8  }
  0x2e   :  { %981 = dma.done.wait [#allocation3], 128  }
  0x2f   :  { %982 = vsyncadd [#allocation3], 4294967168 }
  0x30   :  { %983 = dma.done.wait [#allocation5], 4224  }
  0x31   :  { %984 = vsyncadd [#allocation5], 4294963072 }
  0x32   :  { %985 = dma.done.wait [#allocation8], 896  }
  0x33   :  { %986 = vsyncadd [#allocation8], 4294966400  ;;  %v995_v0 = vmov 0.0   ;;  %vm996_vm0 = vmmov 0   ;;  %vm146_vm1 = vcmask 1044480   ;;  %vm142_vm2 = vcmask 39936  }
  0x34   :  { %765 = vmatprep.subr.mxu0 %v995_v0  ;;  %770 = vmatprep.subr.mxu1 %v995_v0  ;;  %v72_v1 = vld [vmem:[#allocation7 + $0x8] sm:$0x1f]  ;;  %v71_v2 = vld [vmem:[#allocation7] sm:$0x1f]  ;;  %v70_v3 = vld [vmem:[#allocation4] sm:$0xff] }
  0x35   :  { %767 = vmatprep.mubr.msk.f32.mxu0 %vm996_vm0, %v995_v0  ;;  %772 = vmatprep.mubr.msk.f32.mxu1 %vm996_vm0, %v995_v0  ;;  %v69_v4 = vld [vmem:[#allocation2] sm:$0xff]  ;;  %v865_v5 = vld [vmem:[#allocation6 + $0x38] sm:$0xff]   ;;  %v867_v7 = vld [vmem:[#allocation6 + $0x28] sm:$0xff]  }
  0x36   :  { %766 = vmatpush3.msk.msra.mxu0 %vm146_vm1, %v72_v1  ;;  %771 = vmatpush3.msk.msra.mxu1 %vm146_vm1, %v71_v2  ;;  %v866_v6 = vld [vmem:[#allocation6 + $0x30] sm:$0xff]   ;;  %v868_v8 = vld [vmem:[#allocation6 + $0x20] sm:$0xff]   ;;  %v869_v9 = vld [vmem:[#allocation6 + $0x18] sm:$0xff]  }
  0x37   :  { %768 = vmatmul.mubr.msk.f32.vlgmr.msra.gmra.mxu0 %vm142_vm2, %v70_v3  ;;  %773 = vmatmul.mubr.msk.f32.vlgmr.msra.gmra.mxu1 %vm142_vm2, %v69_v4  ;;  %v870_v10 = vld [vmem:[#allocation6 + $0x10] sm:$0xff]   ;;  %v871_v11 = vld [vmem:[#allocation6 + $0x8] sm:$0xff]   ;;  %v872_v12 = vld [vmem:[#allocation6] sm:$0xff]  }
  0x38   :  { %775 = vmatprep.subr.bf16.mxu0 %v995_v0  ;;  %791 = vmatprep.mubr.msk.bf16.mxu0 %vm996_vm0, %v995_v0  ;;  %v873_v13 = vld [vmem:[#allocation6 + $0x78] sm:$0xff]   ;;  %v874_v14 = vld [vmem:[#allocation6 + $0x70] sm:$0xff]   ;;  %v875_v15 = vld [vmem:[#allocation6 + $0x68] sm:$0xff]  }
  0x39   :  { %776 = vmatpush3.bf16.msra.mxu0 %v865_v5  ;;  %795 = vmatprep.subr.bf16.mxu1 %v995_v0  ;;  %v876_v16 = vld [vmem:[#allocation6 + $0x60] sm:$0xff]   ;;  %v877_v17 = vld [vmem:[#allocation6 + $0x58] sm:$0xff]   ;;  %v878_v18 = vld [vmem:[#allocation6 + $0x50] sm:$0xff]  }
  0x3a   :  { %777 = vmatprep.subr.bf16.mxu0 %v995_v0  ;;  %811 = vmatprep.mubr.msk.bf16.mxu1 %vm996_vm0, %v995_v0  ;;  %v688_v20 = vld [vmem:[#allocation7 + $0x10] ss:$0 sm:$0xff]  ;;  %v879_v27 = vld [vmem:[#allocation6 + $0x48] sm:$0xff]   ;;  %v880_v28 = vld [vmem:[#allocation6 + $0x40] sm:$0xff]  }
  0x3b   :  { %796 = vmatpush3.bf16.msra.mxu1 %v873_v13  ;;  %v881_v29 = vld [vmem:[#allocation6 + $0xb8] sm:$0xff]   ;;  %v882_v30 = vld [vmem:[#allocation6 + $0xb0] sm:$0xff]   ;;  %v883_v31 = vld [vmem:[#allocation6 + $0xa8] sm:$0xff]  }
  0x3c   :  { %797 = vmatprep.subr.bf16.mxu1 %v995_v0  ;;  %v689_v32 = vld [vmem:[#allocation7 + $0x18] ss:$0 sm:$0xff]  ;;  %v884_v40 = vld [vmem:[#allocation6 + $0xa0] sm:$0xff]   ;;  %v886_v42 = vld [vmem:[#allocation6 + $0x90] sm:$0xff]  }
  0x3d   :  { %778 = vmatpush3.bf16.msra.mxu0 %v866_v6  ;;  %v885_v41 = vld [vmem:[#allocation6 + $0x98] sm:$0xff]   ;;  %v887_v43 = vld [vmem:[#allocation6 + $0x88] sm:$0xff]   ;;  %v888_v44 = vld [vmem:[#allocation6 + $0x80] sm:$0xff]  }
  0x3e   :  { %779 = vmatprep.subr.bf16.mxu0 %v995_v0  ;;  %v889_v45 = vld [vmem:[#allocation6 + $0xf8] sm:$0xff]   ;;  %v890_v46 = vld [vmem:[#allocation6 + $0xf0] sm:$0xff]   ;;  %v891_v47 = vld [vmem:[#allocation6 + $0xe8] sm:$0xff]  }
  0x3f   :  { %798 = vmatpush3.bf16.msra.mxu1 %v874_v14  ;;  %v698_v48 = vld [vmem:[#allocation7 + $0x20] ss:$0 sm:$0xff]  ;;  %v893_v57 = vld [vmem:[#allocation6 + $0xd8] sm:$0xff]   ;;  %v894_v58 = vld [vmem:[#allocation6 + $0xd0] sm:$0xff]  }
  0x40   :  { %799 = vmatprep.subr.bf16.mxu1 %v995_v0  ;;  %v892_v56 = vld [vmem:[#allocation6 + $0xe0] sm:$0xff]   ;;  %v895_v59 = vld [vmem:[#allocation6 + $0xc8] sm:$0xff]   ;;  %v716_v6 = vld [vmem:[#allocation7 + $0x30] ss:$0 sm:$0xff] }
  0x41   :  { %780 = vmatpush3.bf16.msra.mxu0 %v867_v7  ;;  %v896_v60 = vld [vmem:[#allocation6 + $0xc0] sm:$0xff]   ;;  %v707_v61 = vld [vmem:[#allocation7 + $0x28] ss:$0 sm:$0xff] }
  0x42   :  { %781 = vmatprep.subr.bf16.mxu0 %v995_v0 }
  0x43   :  { %800 = vmatpush3.bf16.msra.mxu1 %v875_v15 }
  0x44   :  { %801 = vmatprep.subr.bf16.mxu1 %v995_v0 }
  0x45   :  { %782 = vmatpush3.bf16.msra.mxu0 %v868_v8 }
  0x46   :  { %783 = vmatprep.subr.bf16.mxu0 %v995_v0 }
  0x47   :  { %802 = vmatpush3.bf16.msra.mxu1 %v876_v16 }
  0x48   :  { %803 = vmatprep.subr.bf16.mxu1 %v995_v0 }
  0x49   :  { %784 = vmatpush3.bf16.msra.mxu0 %v869_v9 }
  0x4a   :  { %785 = vmatprep.subr.bf16.mxu0 %v995_v0 }
  0x4b   :  { %804 = vmatpush3.bf16.msra.mxu1 %v877_v17 }
  0x4c   :  { %805 = vmatprep.subr.bf16.mxu1 %v995_v0 }
  0x4d   :  { %786 = vmatpush3.bf16.msra.mxu0 %v870_v10 }
  0x4e   :  { %787 = vmatprep.subr.bf16.mxu0 %v995_v0 }
  0x4f   :  { %806 = vmatpush3.bf16.msra.mxu1 %v878_v18 }
  0x50   :  { %807 = vmatprep.subr.bf16.mxu1 %v995_v0 }
  0x51   :  { %788 = vmatpush3.bf16.msra.mxu0 %v871_v11 }
  0x52   :  { %789 = vmatprep.subr.bf16.mxu0 %v995_v0 }
  0x53   :  { %808 = vmatpush3.bf16.msra.mxu1 %v879_v27 }
  0x54   :  { %809 = vmatprep.subr.bf16.mxu1 %v995_v0 }
  0x55   :  { %790 = vmatpush3.bf16.msra.mxu0 %v872_v12 }
  0x56   :  { %815 = vmatprep.subr.bf16.mxu0 %v995_v0 }
  0x57   :  { %810 = vmatpush3.bf16.msra.mxu1 %v880_v28 }
  0x58   :  { %835 = vmatprep.subr.bf16.mxu1 %v995_v0 }
  0xf7   :  { %v216_v19 = vpop.f32.mrf.mxu0  ;;  %v292_v21 = vpop.f32.mrf.mxu1 }
  0xf8   :  { %v293_v22 = vadd.f32 %v292_v21, %v216_v19 }
  0xf9   :  { %v769_v23 = vpop.f32.mrf.mxu0  ;;  %v774_v24 = vpop.f32.mrf.mxu1 }
  0xfa   :  { %v300_v25 = vadd.f32 %v688_v20, %v293_v22 }
  0xfc   :  { %v301_v26 = vpack.c.bf16 %v300_v25, %v300_v25 }
  0xfe   :  { %792 = vmatmul.mubr.bf16.vlgmr.msra.gmra.mxu0 %v301_v26 }
  0xff   :  { %831 = vmatprep.mubr.msk.bf16.mxu0 %vm996_vm0, %v995_v0  ;;  %816 = vmatpush3.bf16.msra.mxu0 %v881_v29 }
 0x100   :  { %817 = vmatprep.subr.bf16.mxu0 %v995_v0 }
 0x103   :  { %818 = vmatpush3.bf16.msra.mxu0 %v882_v30 }
 0x104   :  { %819 = vmatprep.subr.bf16.mxu0 %v995_v0 }
 0x107   :  { %820 = vmatpush3.bf16.msra.mxu0 %v883_v31 }
 0x108   :  { %821 = vmatprep.subr.bf16.mxu0 %v995_v0 }
 0x10b   :  { %822 = vmatpush3.bf16.msra.mxu0 %v884_v40 }
 0x10c   :  { %823 = vmatprep.subr.bf16.mxu0 %v995_v0 }
 0x10f   :  { %824 = vmatpush3.bf16.msra.mxu0 %v885_v41 }
 0x110   :  { %825 = vmatprep.subr.bf16.mxu0 %v995_v0 }
 0x113   :  { %826 = vmatpush3.bf16.msra.mxu0 %v886_v42 }
 0x114   :  { %827 = vmatprep.subr.bf16.mxu0 %v995_v0 }
 0x117   :  { %828 = vmatpush3.bf16.msra.mxu0 %v887_v43 }
 0x118   :  { %829 = vmatprep.subr.bf16.mxu0 %v995_v0 }
 0x11b   :  { %830 = vmatpush3.bf16.msra.mxu0 %v888_v44 }
 0x1be   :  { %v388_v33 = vpop.f32.mrf.mxu0 }
 0x1bf   :  { %v389_v34 = vadd.f32 %v689_v32, %v388_v33 }
 0x1c0   :  { %v793_v35 = vpop.f32.mrf.mxu0 }
 0x1c1   :  { %v394_v36 = vmax.f32 %v389_v34, 0.0 }
 0x1c2   :  { %v391_v37 = vpop.f32.mrf.mxu0 }
 0x1c3   :  { %v395_v38 = vpack.c.bf16 %v394_v36, %v394_v36 }
 0x1c4   :  { %v794_v39 = vpop.f32.mrf.mxu0 }
 0x1c5   :  { %812 = vmatmul.mubr.bf16.vlgmr.msra.gmra.mxu1 %v395_v38 }
 0x1c6   :  { %851 = vmatprep.mubr.msk.bf16.mxu1 %vm996_vm0, %v995_v0  ;;  %836 = vmatpush3.bf16.msra.mxu1 %v889_v45 }
 0x1c7   :  { %837 = vmatprep.subr.bf16.mxu1 %v995_v0 }
 0x1ca   :  { %838 = vmatpush3.bf16.msra.mxu1 %v890_v46 }
 0x1cb   :  { %839 = vmatprep.subr.bf16.mxu1 %v995_v0 }
 0x1ce   :  { %840 = vmatpush3.bf16.msra.mxu1 %v891_v47 }
 0x1cf   :  { %841 = vmatprep.subr.bf16.mxu1 %v995_v0 }
 0x1d2   :  { %842 = vmatpush3.bf16.msra.mxu1 %v892_v56 }
 0x1d3   :  { %843 = vmatprep.subr.bf16.mxu1 %v995_v0 }
 0x1d6   :  { %844 = vmatpush3.bf16.msra.mxu1 %v893_v57 }
 0x1d7   :  { %845 = vmatprep.subr.bf16.mxu1 %v995_v0 }
 0x1da   :  { %846 = vmatpush3.bf16.msra.mxu1 %v894_v58 }
 0x1db   :  { %847 = vmatprep.subr.bf16.mxu1 %v995_v0 }
 0x1de   :  { %848 = vmatpush3.bf16.msra.mxu1 %v895_v59 }
 0x1df   :  { %849 = vmatprep.subr.bf16.mxu1 %v995_v0 }
 0x1e2   :  { %850 = vmatpush3.bf16.msra.mxu1 %v896_v60 }
 0x285   :  { %v482_v49 = vpop.f32.mrf.mxu1 }
 0x286   :  { %v483_v50 = vadd.f32 %v698_v48, %v482_v49 }
 0x287   :  { %v813_v51 = vpop.f32.mrf.mxu1 }
 0x288   :  { %897 = vtanh.f32 %v483_v50 }
 0x289   :  { %v485_v52 = vpop.f32.mrf.mxu1 }
 0x28b   :  { %v814_v53 = vpop.f32.mrf.mxu1 }
 0x295   :  { %v898_v54 = vpop.eup %897 }
 0x296   :  { %v489_v55 = vpack.c.bf16 %v898_v54, %v898_v54 }
 0x298   :  { %832 = vmatmul.mubr.bf16.vlgmr.msra.gmra.mxu0 %v489_v55 }
 0x358   :  { %v576_v62 = vpop.f32.mrf.mxu0 }
 0x359   :  { %v577_v63 = vadd.f32 %v707_v61, %v576_v62 }
 0x35a   :  { %v833_v1 = vpop.f32.mrf.mxu0 }
 0x35b   :  { %899 = vtanh.f32 %v577_v63 }
 0x35c   :  { %v579_v2 = vpop.f32.mrf.mxu0 }
 0x35e   :  { %v834_v3 = vpop.f32.mrf.mxu0 }
 0x368   :  { %v900_v4 = vpop.eup %899 }
 0x369   :  { %v583_v5 = vpack.c.bf16 %v900_v4, %v900_v4 }
 0x36b   :  { %852 = vmatmul.mubr.bf16.vlgmr.msra.gmra.mxu1 %v583_v5 }
 0x42b   :  { %v670_v7 = vpop.f32.mrf.mxu1 }
 0x42c   :  { %v671_v8 = vadd.f32 %v716_v6, %v670_v7 }
 0x42d   :  { %v853_v9 = vpop.f32.mrf.mxu1 }
 0x42e   :  { %676 = vst [vmem:[%s1087_s4] sm:$0xff] %v671_v8 }
 0x42f   :  { %v673_v0 = vpop.f32.mrf.mxu1 }
 0x431   :  { %v854_v10 = vpop.f32.mrf.mxu1 }
 0x432   :  { %681 = vsyncpa [#allocation3], 1 }
 0x433   :  { %682 = vsyncpa [#allocation5], 1 }
 0x434   :  { %683 = vsyncpa [#allocation8], 1 }

</bundles_post_ra>
